<compile_context>
chip_gen: v7x
topology: tpu7x:2x2x1
jax: 0.10.0
libtpu: 0.0.40
codegen_flags: <defaults>
</compile_context>

<pallas_src>
import jax
import jax.numpy as jnp
from jax.experimental import pallas as pl
from jax.experimental.pallas import tpu as pltpu


def _resblock_kernel(x_ref, wf_ref, bf_ref, w2_ref, b2_ref, out_ref, h1pad_ref):
    # x_ref:   (1, H+2, W*Cin)    vertically zero-padded input rows (channels-minor)
    # wf_ref:  (3, W*Cin, 2*W*Cout)  banded [conv1 | shortcut] weights (BN scale folded)
    # bf_ref:  (1, 2*W*Cout)      [BN1 shift | BN_s shift], tiled over W
    # w2_ref:  (3, W*Cout, W*Cout)   banded conv2 weights (BN2 scale folded)
    # b2_ref:  (1, W*Cout)        BN2 shift, tiled over W
    # out_ref: (1, H, W*Cout)     lane-dense output
    # h1pad_ref: VMEM scratch (H+2, W*Cout) for the vertical re-pad of h1
    H, WCo = out_ref.shape[1], out_ref.shape[2]

    xp = x_ref[0]        # (H+2, W*Cin)
    wf = wf_ref[...]     # (3, W*Cin, 2*W*Cout)
    w2 = w2_ref[...]     # (3, W*Cout, W*Cout)

    def lrelu(v):
        return jnp.where(v > 0, v, 0.2 * v)

    # --- conv1 + shortcut conv, fused: one banded matmul per kh row-tap ---
    y = jnp.dot(xp[0:H, :], wf[0], preferred_element_type=jnp.float32)
    for kh in (1, 2):
        y = y + jnp.dot(xp[kh:kh + H, :], wf[kh],
                        preferred_element_type=jnp.float32)
    y = y + bf_ref[...]                    # (H, 2*W*Cout)

    h1 = lrelu(y[:, :WCo])                 # conv1 -> BN1 -> LeakyReLU   (H, W*Cout)
    xs = y[:, WCo:]                        # adjust_conv -> BN (shortcut)

    # Vertical zero-pad of h1 only; horizontal padding lives inside the band weights.
    h1pad_ref[0:1, :] = jnp.zeros((1, WCo), jnp.float32)
    h1pad_ref[H + 1:H + 2, :] = jnp.zeros((1, WCo), jnp.float32)
    h1pad_ref[1:H + 1, :] = h1
    h1p = h1pad_ref[...]                   # (H+2, W*Cout)

    # --- conv2 -> BN2 ---
    h2 = jnp.dot(h1p[0:H, :], w2[0], preferred_element_type=jnp.float32)
    for kh in (1, 2):
        h2 = h2 + jnp.dot(h1p[kh:kh + H, :], w2[kh],
                          preferred_element_type=jnp.float32)
    h2 = h2 + b2_ref[...]                  # (H, W*Cout)

    out_ref[0] = lrelu(xs + h2)            # lane-dense (H, W*Cout) store


def _band_matrix(w_hwio, W):
    """Fold the kw tap axis + horizontal zero-padding of a 3x3 conv into a banded
    matrix.  w_hwio: (3, 3, Ci, Co).  Returns (3, W*Ci, W*Co) with
      M[kh, w_in*Ci+ci, w_out*Co+co] = w_hwio[kh, w_in-w_out+1, ci, co]  if |w_in-w_out|<=1
                                       0                                 otherwise.
    Built at trace time (XLA), so it adds no in-kernel work."""
    Kh, Kw, Ci, Co = w_hwio.shape
    M = jnp.zeros((Kh, W * Ci, W * Co), jnp.float32)
    for kw in range(Kw):
        d = kw - 1                          # w_in = w_out + d
        for w_out in range(W):
            w_in = w_out + d
            if 0 <= w_in < W:
                M = M.at[:, w_in * Ci:(w_in + 1) * Ci,
                         w_out * Co:(w_out + 1) * Co].set(w_hwio[:, kw])
    return M


def resblock_forward(x_nchw, params):
    """x_nchw: (N, Cin, H, W) float32.  Returns (N, Cout, H, W) float32."""
    N, Cin, H, W = x_nchw.shape
    Cout = params["w1"].shape[-1]
    Hp = H + 2
    WCi, WCo = W * Cin, W * Cout

    # Fold inference-form BN scales into the conv weights (conv bias is disabled).
    w1s = params["w1"] * params["s1"].reshape(1, 1, 1, Cout)
    wss = params["ws"] * params["ss"].reshape(1, 1, 1, Cout)
    w2s = params["w2"] * params["s2"].reshape(1, 1, 1, Cout)

    # Banded weights; conv1 and shortcut fused along the output-column axis.
    wf = jnp.concatenate([_band_matrix(w1s, W), _band_matrix(wss, W)], axis=2)
    w2b = _band_matrix(w2s, W)
    bf = jnp.concatenate([jnp.tile(params["b1"], (1, W)),
                          jnp.tile(params["bs"], (1, W))], axis=1)   # (1, 2*WCo)
    b2t = jnp.tile(params["b2"], (1, W))                             # (1, WCo)

    # NCHW -> channels-minor rows (N, H, W*Cin); pad only 2 zero rows vertically
    # (horizontal zero-padding is already folded into the band matrices).
    x = jnp.transpose(x_nchw, (0, 2, 3, 1)).reshape(N, H, WCi).astype(jnp.float32)
    xp = jnp.pad(x, ((0, 0), (1, 1), (0, 0)))

    out_flat = pl.pallas_call(
        _resblock_kernel,
        out_shape=jax.ShapeDtypeStruct((N, H, WCo), jnp.float32),
        grid_spec=pltpu.PrefetchScalarGridSpec(
            num_scalar_prefetch=0,
            grid=(N,),
            in_specs=[
                pl.BlockSpec((1, Hp, WCi), lambda n: (n, 0, 0)),     # x rows
                pl.BlockSpec((3, WCi, 2 * WCo), lambda n: (0, 0, 0)),  # fused band W
                pl.BlockSpec((1, 2 * WCo), lambda n: (0, 0)),          # fused shift
                pl.BlockSpec((3, WCo, WCo), lambda n: (0, 0, 0)),      # conv2 band W
                pl.BlockSpec((1, WCo), lambda n: (0, 0)),              # BN2 shift
            ],
            out_specs=pl.BlockSpec((1, H, WCo), lambda n: (n, 0, 0)),
            scratch_shapes=[pltpu.VMEM((Hp, WCo), jnp.float32)],
        ),
        compiler_params=pltpu.CompilerParams(
            dimension_semantics=("parallel",)),
    )(xp, wf, bf, w2b, b2t)

    # (N, H, W*Cout) -> NCHW
    return jnp.transpose(out_flat.reshape(N, H, W, Cout), (0, 3, 1, 2))


# ------------------------- reference / params / driver -------------------------

def _reference(x_nchw, params):
    """Pure-JAX reference of the ResBlock forward (inference-form BN)."""
    x = jnp.transpose(x_nchw, (0, 2, 3, 1))
    dn = ("NHWC", "HWIO", "NHWC")

    def conv(v, w):
        return jax.lax.conv_general_dilated(v, w, (1, 1), ((1, 1), (1, 1)),
                                            dimension_numbers=dn)

    def bn(v, s, b):
        return v * s.reshape(1, 1, 1, -1) + b.reshape(1, 1, 1, -1)

    lrelu = lambda v: jnp.where(v > 0, v, 0.2 * v)
    h = lrelu(bn(conv(x, params["w1"]), params["s1"], params["b1"]))
    h = bn(conv(h, params["w2"]), params["s2"], params["b2"])
    xs = bn(conv(x, params["ws"]), params["ss"], params["bs"])
    return jnp.transpose(lrelu(xs + h), (0, 3, 1, 2))


def _bn_scale_shift(key, c, eps=1e-5):
    k1, k2, k3, k4 = jax.random.split(key, 4)
    gamma = 1.0 + 0.1 * jax.random.normal(k1, (c,), jnp.float32)
    beta = 0.1 * jax.random.normal(k2, (c,), jnp.float32)
    mean = 0.1 * jax.random.normal(k3, (c,), jnp.float32)
    var = jnp.abs(jax.random.normal(k4, (c,), jnp.float32)) + 0.5
    scale = gamma * jax.lax.rsqrt(var + eps)
    shift = beta - mean * scale
    return scale.reshape(1, c), shift.reshape(1, c)


def init_params(key, in_ch, out_ch):
    keys = jax.random.split(key, 6)
    # conv weights HWIO (kh, kw, cin, cout); no bias (BatchNorm case)
    w1 = 0.1 * jax.random.normal(keys[0], (3, 3, in_ch, out_ch), jnp.float32)
    w2 = 0.1 * jax.random.normal(keys[1], (3, 3, out_ch, out_ch), jnp.float32)
    ws = 0.1 * jax.random.normal(keys[2], (3, 3, in_ch, out_ch), jnp.float32)
    s1, b1 = _bn_scale_shift(keys[3], out_ch)
    s2, b2 = _bn_scale_shift(keys[4], out_ch)
    ss, bs = _bn_scale_shift(keys[5], out_ch)
    return dict(w1=w1, s1=s1, b1=b1, w2=w2, s2=s2, b2=b2, ws=ws, ss=ss, bs=bs)


if __name__ == "__main__":
    key = jax.random.PRNGKey(0)
    k_x, k_p = jax.random.split(key)

    N, Cin, Cout, H, W = 2, 4, 8, 16, 16   # in_ch != out_ch -> exercises adjust_conv
    x = jax.random.normal(k_x, (N, Cin, H, W), jnp.float32)
    params = init_params(k_p, Cin, Cout)

    out = resblock_forward(x, params)
    jax.block_until_ready(out)
    assert out.shape == (N, Cout, H, W)

    ref = _reference(x, params)
    assert float(jnp.max(jnp.abs(out - ref))) < 1e-3
    print("KERNEL_OK")
</pallas_src>

<mosaic_0001>
module attributes {stable_mosaic.version = 11 : i64} {
  func.func @_resblock_kernel(%arg0: i32, %arg1: memref<1x18x64xf32, #tpu.memory_space<vmem>>, %arg2: memref<3x64x256xf32, #tpu.memory_space<vmem>>, %arg3: memref<1x256xf32, #tpu.memory_space<vmem>>, %arg4: memref<3x128x128xf32, #tpu.memory_space<vmem>>, %arg5: memref<1x128xf32, #tpu.memory_space<vmem>>, %arg6: memref<1x16x128xf32, #tpu.memory_space<vmem>>, %arg7: memref<18x128xf32, #tpu.memory_space<vmem>>) attributes {dimension_semantics = [#tpu.dimension_semantics<parallel>], iteration_bounds = array<i64: 2>, scalar_prefetch = 0 : i64, scratch_operands = 1 : i64, tpu.core_type = #tpu.core_type<tc>, window_params = [{transform_indices = @transform_0, window_bounds = array<i64: 1, 18, 64>}, {pipeline_mode = #tpu.pipeline_mode<synchronous>, transform_indices = @transform_1, window_bounds = array<i64: 3, 64, 256>}, {pipeline_mode = #tpu.pipeline_mode<synchronous>, transform_indices = @transform_2, window_bounds = array<i64: 1, 256>}, {pipeline_mode = #tpu.pipeline_mode<synchronous>, transform_indices = @transform_3, window_bounds = array<i64: 3, 128, 128>}, {pipeline_mode = #tpu.pipeline_mode<synchronous>, transform_indices = @transform_4, window_bounds = array<i64: 1, 128>}, {transform_indices = @transform_5, window_bounds = array<i64: 1, 16, 128>}]} {
    %c0 = arith.constant 0 : index
    %c0_0 = arith.constant 0 : index
    %c0_1 = arith.constant 0 : index
    %0 = vector.load %arg1[%c0, %c0_0, %c0_1] : memref<1x18x64xf32, #tpu.memory_space<vmem>>, vector<1x18x64xf32>
    %1 = vector.shape_cast %0 : vector<1x18x64xf32> to vector<18x64xf32>
    %c0_2 = arith.constant 0 : index
    %c0_3 = arith.constant 0 : index
    %c0_4 = arith.constant 0 : index
    %2 = vector.load %arg2[%c0_2, %c0_3, %c0_4] : memref<3x64x256xf32, #tpu.memory_space<vmem>>, vector<3x64x256xf32>
    %c0_5 = arith.constant 0 : index
    %c0_6 = arith.constant 0 : index
    %c0_7 = arith.constant 0 : index
    %3 = vector.load %arg4[%c0_5, %c0_6, %c0_7] : memref<3x128x128xf32, #tpu.memory_space<vmem>>, vector<3x128x128xf32>
    %4 = vector.extract_strided_slice %1 {offsets = [0, 0], sizes = [16, 64], strides = [1, 1]} : vector<18x64xf32> to vector<16x64xf32>
    %5 = vector.extract_strided_slice %2 {offsets = [0, 0, 0], sizes = [1, 64, 256], strides = [1, 1, 1]} : vector<3x64x256xf32> to vector<1x64x256xf32>
    %6 = vector.shape_cast %5 : vector<1x64x256xf32> to vector<64x256xf32>
    %cst = arith.constant dense<0.000000e+00> : vector<16x256xf32>
    %7 = tpu.matmul %4, %6, %cst {dimension_numbers = #tpu.dot_dimension_numbers<[1], [0], [0], [1], [0, 0, 1, 1], [], []>} : vector<16x64xf32>, vector<64x256xf32>, vector<16x256xf32> -> vector<16x256xf32>
    %8 = vector.extract_strided_slice %1 {offsets = [1, 0], sizes = [16, 64], strides = [1, 1]} : vector<18x64xf32> to vector<16x64xf32>
    %9 = vector.extract_strided_slice %2 {offsets = [1, 0, 0], sizes = [1, 64, 256], strides = [1, 1, 1]} : vector<3x64x256xf32> to vector<1x64x256xf32>
    %10 = vector.shape_cast %9 : vector<1x64x256xf32> to vector<64x256xf32>
    %cst_8 = arith.constant dense<0.000000e+00> : vector<16x256xf32>
    %11 = tpu.matmul %8, %10, %cst_8 {dimension_numbers = #tpu.dot_dimension_numbers<[1], [0], [0], [1], [0, 0, 1, 1], [], []>} : vector<16x64xf32>, vector<64x256xf32>, vector<16x256xf32> -> vector<16x256xf32>
    %12 = arith.addf %7, %11 : vector<16x256xf32>
    %13 = vector.extract_strided_slice %1 {offsets = [2, 0], sizes = [16, 64], strides = [1, 1]} : vector<18x64xf32> to vector<16x64xf32>
    %14 = vector.extract_strided_slice %2 {offsets = [2, 0, 0], sizes = [1, 64, 256], strides = [1, 1, 1]} : vector<3x64x256xf32> to vector<1x64x256xf32>
    %15 = vector.shape_cast %14 : vector<1x64x256xf32> to vector<64x256xf32>
    %cst_9 = arith.constant dense<0.000000e+00> : vector<16x256xf32>
    %16 = tpu.matmul %13, %15, %cst_9 {dimension_numbers = #tpu.dot_dimension_numbers<[1], [0], [0], [1], [0, 0, 1, 1], [], []>} : vector<16x64xf32>, vector<64x256xf32>, vector<16x256xf32> -> vector<16x256xf32>
    %17 = arith.addf %12, %16 : vector<16x256xf32>
    %c0_10 = arith.constant 0 : index
    %c0_11 = arith.constant 0 : index
    %18 = vector.load %arg3[%c0_10, %c0_11] : memref<1x256xf32, #tpu.memory_space<vmem>>, vector<1x256xf32>
    %19 = vector.broadcast %18 : vector<1x256xf32> to vector<16x256xf32>
    %20 = arith.addf %17, %19 : vector<16x256xf32>
    %21 = vector.extract_strided_slice %20 {offsets = [0, 0], sizes = [16, 128], strides = [1, 1]} : vector<16x256xf32> to vector<16x128xf32>
    %cst_12 = arith.constant 0.000000e+00 : f32
    %22 = vector.broadcast %cst_12 : f32 to vector<16x128xf32>
    %23 = arith.cmpf ogt, %21, %22 : vector<16x128xf32>
    %cst_13 = arith.constant 2.000000e-01 : f32
    %24 = vector.broadcast %cst_13 : f32 to vector<16x128xf32>
    %25 = arith.mulf %24, %21 : vector<16x128xf32>
    %26 = arith.select %23, %21, %25 : vector<16x128xi1>, vector<16x128xf32>
    %27 = vector.extract_strided_slice %20 {offsets = [0, 128], sizes = [16, 128], strides = [1, 1]} : vector<16x256xf32> to vector<16x128xf32>
    %cst_14 = arith.constant 0.000000e+00 : f32
    %28 = vector.broadcast %cst_14 : f32 to vector<1x128xf32>
    %c0_15 = arith.constant 0 : index
    %c0_16 = arith.constant 0 : index
    %29 = vector.load %arg7[%c0_15, %c0_16] : memref<18x128xf32, #tpu.memory_space<vmem>>, vector<1x128xf32>
    tpu.vector_store %arg7[%c0_15, %c0_16], %28 {strides = array<i32>} : memref<18x128xf32, #tpu.memory_space<vmem>>, vector<1x128xf32>,
    %cst_17 = arith.constant 0.000000e+00 : f32
    %30 = vector.broadcast %cst_17 : f32 to vector<1x128xf32>
    %c17 = arith.constant 17 : index
    %c0_18 = arith.constant 0 : index
    %31 = vector.load %arg7[%c17, %c0_18] : memref<18x128xf32, #tpu.memory_space<vmem>>, vector<1x128xf32>
    tpu.vector_store %arg7[%c17, %c0_18], %30 {strides = array<i32>} : memref<18x128xf32, #tpu.memory_space<vmem>>, vector<1x128xf32>,
    %c1 = arith.constant 1 : index
    %c0_19 = arith.constant 0 : index
    %32 = vector.load %arg7[%c1, %c0_19] : memref<18x128xf32, #tpu.memory_space<vmem>>, vector<16x128xf32>
    tpu.vector_store %arg7[%c1, %c0_19], %26 {strides = array<i32>} : memref<18x128xf32, #tpu.memory_space<vmem>>, vector<16x128xf32>,
    %c0_20 = arith.constant 0 : index
    %c0_21 = arith.constant 0 : index
    %33 = vector.load %arg7[%c0_20, %c0_21] : memref<18x128xf32, #tpu.memory_space<vmem>>, vector<18x128xf32>
    %34 = vector.extract_strided_slice %33 {offsets = [0, 0], sizes = [16, 128], strides = [1, 1]} : vector<18x128xf32> to vector<16x128xf32>
    %35 = vector.extract_strided_slice %3 {offsets = [0, 0, 0], sizes = [1, 128, 128], strides = [1, 1, 1]} : vector<3x128x128xf32> to vector<1x128x128xf32>
    %36 = vector.shape_cast %35 : vector<1x128x128xf32> to vector<128x128xf32>
    %cst_22 = arith.constant dense<0.000000e+00> : vector<16x128xf32>
    %37 = tpu.matmul %34, %36, %cst_22 {dimension_numbers = #tpu.dot_dimension_numbers<[1], [0], [0], [1], [0, 0, 1, 1], [], []>} : vector<16x128xf32>, vector<128x128xf32>, vector<16x128xf32> -> vector<16x128xf32>
    %38 = vector.extract_strided_slice %33 {offsets = [1, 0], sizes = [16, 128], strides = [1, 1]} : vector<18x128xf32> to vector<16x128xf32>
    %39 = vector.extract_strided_slice %3 {offsets = [1, 0, 0], sizes = [1, 128, 128], strides = [1, 1, 1]} : vector<3x128x128xf32> to vector<1x128x128xf32>
    %40 = vector.shape_cast %39 : vector<1x128x128xf32> to vector<128x128xf32>
    %cst_23 = arith.constant dense<0.000000e+00> : vector<16x128xf32>
    %41 = tpu.matmul %38, %40, %cst_23 {dimension_numbers = #tpu.dot_dimension_numbers<[1], [0], [0], [1], [0, 0, 1, 1], [], []>} : vector<16x128xf32>, vector<128x128xf32>, vector<16x128xf32> -> vector<16x128xf32>
    %42 = arith.addf %37, %41 : vector<16x128xf32>
    %43 = vector.extract_strided_slice %33 {offsets = [2, 0], sizes = [16, 128], strides = [1, 1]} : vector<18x128xf32> to vector<16x128xf32>
    %44 = vector.extract_strided_slice %3 {offsets = [2, 0, 0], sizes = [1, 128, 128], strides = [1, 1, 1]} : vector<3x128x128xf32> to vector<1x128x128xf32>
    %45 = vector.shape_cast %44 : vector<1x128x128xf32> to vector<128x128xf32>
    %cst_24 = arith.constant dense<0.000000e+00> : vector<16x128xf32>
    %46 = tpu.matmul %43, %45, %cst_24 {dimension_numbers = #tpu.dot_dimension_numbers<[1], [0], [0], [1], [0, 0, 1, 1], [], []>} : vector<16x128xf32>, vector<128x128xf32>, vector<16x128xf32> -> vector<16x128xf32>
    %47 = arith.addf %42, %46 : vector<16x128xf32>
    %c0_25 = arith.constant 0 : index
    %c0_26 = arith.constant 0 : index
    %48 = vector.load %arg5[%c0_25, %c0_26] : memref<1x128xf32, #tpu.memory_space<vmem>>, vector<1x128xf32>
    %49 = vector.broadcast %48 : vector<1x128xf32> to vector<16x128xf32>
    %50 = arith.addf %47, %49 : vector<16x128xf32>
    %51 = arith.addf %27, %50 : vector<16x128xf32>
    %cst_27 = arith.constant 0.000000e+00 : f32
    %52 = vector.broadcast %cst_27 : f32 to vector<16x128xf32>
    %53 = arith.cmpf ogt, %51, %52 : vector<16x128xf32>
    %cst_28 = arith.constant 2.000000e-01 : f32
    %54 = vector.broadcast %cst_28 : f32 to vector<16x128xf32>
    %55 = arith.mulf %54, %51 : vector<16x128xf32>
    %56 = arith.select %53, %51, %55 : vector<16x128xi1>, vector<16x128xf32>
    %c0_29 = arith.constant 0 : index
    %c0_30 = arith.constant 0 : index
    %c0_31 = arith.constant 0 : index
    %57 = vector.load %arg6[%c0_29, %c0_30, %c0_31] : memref<1x16x128xf32, #tpu.memory_space<vmem>>, vector<1x16x128xf32>
    %58 = vector.shape_cast %57 : vector<1x16x128xf32> to vector<16x128xf32>
    %59 = vector.shape_cast %56 : vector<16x128xf32> to vector<1x16x128xf32>
    tpu.vector_store %arg6[%c0_29, %c0_30, %c0_31], %59 {strides = array<i32>} : memref<1x16x128xf32, #tpu.memory_space<vmem>>, vector<1x16x128xf32>,
    return
  }
  func.func @transform_0(%arg0: i32) -> (i32, i32, i32) {
    %c0_i32 = arith.constant 0 : i32
    %c0_i32_0 = arith.constant 0 : i32
    %c0_i32_1 = arith.constant 0 : i32
    return %arg0, %c0_i32, %c0_i32_0 : i32, i32, i32
  }
  func.func @transform_1(%arg0: i32) -> (i32, i32, i32) {
    %c0_i32 = arith.constant 0 : i32
    %c0_i32_0 = arith.constant 0 : i32
    %c0_i32_1 = arith.constant 0 : i32
    %c0_i32_2 = arith.constant 0 : i32
    return %c0_i32, %c0_i32_0, %c0_i32_1 : i32, i32, i32
  }
  func.func @transform_2(%arg0: i32) -> (i32, i32) {
    %c0_i32 = arith.constant 0 : i32
    %c0_i32_0 = arith.constant 0 : i32
    %c0_i32_1 = arith.constant 0 : i32
    return %c0_i32, %c0_i32_0 : i32, i32
  }
  func.func @transform_3(%arg0: i32) -> (i32, i32, i32) {
    %c0_i32 = arith.constant 0 : i32
    %c0_i32_0 = arith.constant 0 : i32
    %c0_i32_1 = arith.constant 0 : i32
    %c0_i32_2 = arith.constant 0 : i32
    return %c0_i32, %c0_i32_0, %c0_i32_1 : i32, i32, i32
  }
  func.func @transform_4(%arg0: i32) -> (i32, i32) {
    %c0_i32 = arith.constant 0 : i32
    %c0_i32_0 = arith.constant 0 : i32
    %c0_i32_1 = arith.constant 0 : i32
    return %c0_i32, %c0_i32_0 : i32, i32
  }
  func.func @transform_5(%arg0: i32) -> (i32, i32, i32) {
    %c0_i32 = arith.constant 0 : i32
    %c0_i32_0 = arith.constant 0 : i32
    %c0_i32_1 = arith.constant 0 : i32
    return %arg0, %c0_i32, %c0_i32_0 : i32, i32, i32
  }
}

</mosaic_0001>

<bundles_post_ra>
// kernel: tpu_custom_call.1
= control target key start
LH: loop header
LB: loop body
LE: loop exit
PB: predicated region body
PF: predicated region fallthrough
CT: control target
= control target key end

     0   :  { %10 = vsyncpa [#allocation4], 0  ;;  %s1802_s0 = inlined_call_operand.vmem [shape: f32[2,18,64], index: 0, kind: input, shape index: {}]   ;;  %s1803_s1 = inlined_call_operand.hbm [shape: f32[3,64,256], index: 1, kind: input, shape index: {}]   ;;  %s1804_s2 = inlined_call_operand.vmem [shape: f32[1,256], index: 2, kind: input, shape index: {}]   ;;  %s1805_s3 = inlined_call_operand.hbm [shape: f32[3,128,128], index: 3, kind: input, shape index: {}]   ;;  %s1806_s4 = inlined_call_operand.vmem [shape: f32[1,128], index: 4, kind: input, shape index: {}]   ;;  %s1807_s5 = inlined_call_operand.hbm [shape: f32[2,16,128], index: 5, kind: output, shape index: {}]  }
   0x1   :  { %11 = vsyncpa [#allocation7], 0 }
   0x2   :  { %12 = vsyncpa [#allocation5], 0 }
   0x3   :  { %14 = vsyncpa [#allocation5 + $0x1], 0  ;;  %s1579_s18 = smov 0   ;;  %s1581_s19 = smov 0  }
   0x4   :  { %s1583_s20 = smov 0   ;;  %s1585_s21 = smov 0  }
   0x5 LB: > { %s1600_s22 = sadd.s32 4294967295, %s1537_s21   ;;  %s1005_s23 = sadd.s32 4294967294, %s1537_s21   ;;  %s1537_s21 = sphi %s1585_s21, %s1825_s21   ;;  %s1533_s20 = sphi %s1583_s20, %s1824_s20   ;;  %s1529_s19 = sphi %s1581_s19, %s1823_s19   ;;  %s1525_s18 = sphi %s1579_s18, %s1822_s18  }
   0x6   : > { %s1604_s24 = sadd.s32 1, %s1537_s21   ;;  %s137_s25 = sadd.s32 1, %s1533_s20 }
   0x7   : > { %s134_s26 = ssub.s32 %s1537_s21, %s1604_s24  ;;  %p147_p0 = scmp.ne.s32.totalorder %s1533_s20, %s1529_s19 }
   0x8   : > { %p135_p1 = scmp.eq.s32.totalorder %s134_s26, 0  ;;  %p148_p2 = scmp.eq.s32.totalorder %s1600_s22, 1 }
   0x9   : > { %p153_p3 = scmp.ne.s32.totalorder %s1529_s19, %s1525_s18  ;;  %p154_p4 = scmp.eq.s32.totalorder %s1005_s23, 1 }
   0xa   : > { %s1615_s27 = scalar_select %p135_p1, %s1533_s20, %s137_s25  }
   0xb   : > { %p1617_p5 = por %p148_p2, %p147_p0  ;;  %p1621_p6 = por %p154_p4, %p153_p3 }
   0xc   : > { %p1006_p7 = scmp.ge.s32.totalorder %s1537_s21, 1  ;;  %p161_p8 = scmp.lt.s32.totalorder %s1537_s21, 3 }
   0xd   : > { %s1811_s28 = scalar_select %p1617_p5, 1, 0 }
   0xe   : > { %s1812_s29 = scalar_select %p1621_p6, 1, 0 }
   0xf   : > { %p1808_p9 = scmp.eq.s32.totalorder %s1600_s22, 0  ;;  %p1628_p10 = pnand %p1006_p7, %p161_p8 }
  0x10   : > { %s1539_s6 = smov [#allocation3]   ;;  %s1540_s9 = smov [#allocation6]  }
  0x11   : > { %s1813_s30 = scalar_select %p1628_p10, 1, 0 }
  0x12   : > { %s173_s7 = sshll.u32 %s1539_s6, 4  ;;  %p1354_p11 = pneg %p1628_p10  ;;  %s174_s7 = int_to_ptr.vmem [resolvable:$true] %s173_s7 }
  0x13   : > { %s189_s10 = sshll.u32 %s1540_s9, 4  ;;  %s1411_s13 = scalar_lea.hbm %s1803_s1, 6144  ;;  %s1640_s10 = int_to_ptr.vmem [resolvable:$true] %s189_s10 }
  0x14   : > { %p1636_p12 = pnand %p1808_p9, %p1354_p11  ;;  %p1412_p13 = scmp.ne.s32.totalorder %s1803_s1, %s1411_s13 }
  0x15   : > { %p1418_p3 = scmp.lt.u32.totalorder %s1411_s13, %s1803_s1 }
  0x16   : > { %p1413_p0 = pneg %p1636_p12 }
  0x18   : > { %p1414_p1 = pnand %p1413_p0, %p1412_p13 }
  0x1a   : > { %p1415_p2 = pneg %p1414_p1 }
  0x1c   : > { %p1420_p4 = pnand %p1418_p3, %p1415_p2 }
  0x1e   : > { %1423 = shalt.err (!%p1420_p4)
}
  0x1f   : > { %s1424_s23 = scalar_lea.vmem %s174_s7, 6144  ;;  %p1432_p9 = scmp.lt.s32.totalorder %s174_s7, %s174_s7 }
  0x20   : > { %p1425_p7 = scmp.ne.s32.totalorder %s174_s7, %s1424_s23  ;;  %p1433_p6 = scmp.lt.s32.totalorder %s1424_s23, %s1424_s23 }
  0x22   : > { %p1427_p8 = pnand %p1425_p7, %p1413_p0  ;;  %p1434_p5 = por %p1433_p6, %p1432_p9 }
  0x24   : > { %p1428_p11 = pneg %p1427_p8 }
  0x26   : > { %p1435_p10 = pnand %p1434_p5, %p1428_p11 }
  0x28   : > { %1438 = shalt.err (!%p1435_p10)
}
  0x29   : > { %s1541_s25 = smov 256   ;;  %s1542_s26 = smov 16  }
  0x2a   : > { %1357 = dma.hbm_to_vmem [thread:$0]  (!%p1636_p12), %s1803_s1, 6144, %s174_s7, [#allocation4], %s1541_s25, %s1541_s25, %s1542_s26  }
  0x2b   : > { %s1439_s13 = scalar_lea.hbm %s1805_s3, 6144 }
  0x2c   : > { %p1440_p13 = scmp.ne.s32.totalorder %s1805_s3, %s1439_s13  ;;  %p1446_p9 = scmp.lt.u32.totalorder %s1439_s13, %s1805_s3 }
  0x2e   : > { %p1442_p5 = pnand %p1440_p13, %p1413_p0 }
  0x30   : > { %p1443_p6 = pneg %p1442_p5 }
  0x32   : > { %p1448_p10 = pnand %p1446_p9, %p1443_p6 }
  0x34   : > { %1451 = shalt.err (!%p1448_p10)
}
  0x35   : > { %s1452_s7 = scalar_lea.vmem %s1640_s10, 6144  ;;  %p1460_p4 = scmp.lt.s32.totalorder %s1640_s10, %s1640_s10 }
  0x36   : > { %p1453_p1 = scmp.ne.s32.totalorder %s1640_s10, %s1452_s7  ;;  %p1461_p7 = scmp.lt.s32.totalorder %s1452_s7, %s1452_s7 }
  0x38   : > { %p1455_p2 = pnand %p1453_p1, %p1413_p0  ;;  %p1462_p8 = por %p1461_p7, %p1460_p4 }
  0x3a   : > { %p1456_p3 = pneg %p1455_p2 }
  0x3c   : > { %p1463_p11 = pnand %p1462_p8, %p1456_p3 }
  0x3e   : > { %1466 = shalt.err (!%p1463_p11)
}
  0x3f   : > { %s1543_s23 = smov 128   ;;  %s1544_s25 = smov 8  }
  0x40   : > { %1360 = dma.hbm_to_vmem [thread:$0]  (!%p1636_p12), %s1805_s3, 6144, %s1640_s10, [#allocation7], %s1543_s23, %s1543_s23, %s1544_s25  }
  0x41   : > { %p1815_p13 = scmp.ne.s32.totalorder %s1813_s30, 0 }
  0x42   : > { %p1816_p0 = scmp.eq.s32.totalorder (!%p1815_p13), %s1600_s22, 0 }
  0x43   : > { %216 = sbr.rel (%p1815_p13) target bundleno = 627 (0x273), region = 40 }
  0x4a   : > { %1512 = dma.done.wait (%p1816_p0), [#allocation4], 6144   ;;  %p1817_p5 = pmov %p1816_p0 }
  0x4b   : > { %p1818_p6 = pmov %p1816_p0 }
  0x4c   : > { %1514 = vsyncadd (%p1817_p5), [#allocation4], 4294961152 }
  0x4d   : > { %1516 = dma.done.wait (%p1818_p6), [#allocation7], 6144   ;;  %p1819_p9 = pmov %p1816_p0 }
  0x4e   : > { %v1545_v0 = vmov 0.0   ;;  %p248_p12 = scmp.lt.s32.totalorder %s1600_s22, 1  ;;  %v273_v1 = vld [vmem:[#allocation3 + $0x88] sm:$0xff]  ;;  %v275_v2 = vld [vmem:[#allocation3 + $0x98] sm:$0xff]  ;;  %v272_v3 = vld [vmem:[#allocation3 + $0x80] sm:$0xff]  ;;  %vm355_vm0 = vcmask 1046528  }
  0x4f   : > { %1518 = vsyncadd (%p1819_p9), [#allocation7], 4294961152  ;;  %430 = vmatprep.mubr.f32.mxu0 %v1545_v0  ;;  %637 = vst [vmem:[#allocation2] sm:$0x1] %v1545_v0  ;;  %v1187_v4 = vpack.c.bf16 %v275_v2, %v273_v1  ;;  %v274_v5 = vld [vmem:[#allocation3 + $0x90] sm:$0xff]  ;;  %v277_v6 = vld [vmem:[#allocation3 + $0xa8] sm:$0xff] }
  0x50   : > { %638 = vst [vmem:[#allocation2 + $0x11] sm:$0x1] %v1545_v0  ;;  %s249_s30 = scalar_select %p248_p12, %s1600_s22, 1  ;;  %v279_v7 = vld [vmem:[#allocation3 + $0xb8] sm:$0xff]  ;;  %v1189_v8 = vpack.c.bf16 %v274_v5, %v272_v3  ;;  %v276_v10 = vld [vmem:[#allocation3 + $0xa0] sm:$0xff]  ;;  %v278_v11 = vld [vmem:[#allocation3 + $0xb0] sm:$0xff] }
  0x51   : > { %v1191_v9 = vpack.c.bf16 %v279_v7, %v277_v6  ;;  %v281_v12 = vld [vmem:[#allocation3 + $0xc8] sm:$0xff]  ;;  %1188 = vmatprep.subr.bf16.mxu0 %v1187_v4  ;;  %v283_v13 = vld [vmem:[#allocation3 + $0xd8] sm:$0xff]  ;;  %v1193_v14 = vpack.c.bf16 %v278_v11, %v276_v10  ;;  %v280_v16 = vld [vmem:[#allocation3 + $0xc0] sm:$0xff]  ;;  %vm361_vm1 = vcmask 523264   ;;  %vm524_vm2 = vcmask 1045504   ;;  %s245_s14 = sand.u32 1, %s1529_s19  }
  0x52   : > { %s1343_s8 = smul.u32 24, %s249_s30  ;;  %1190 = vmatpush1.bf16.msra.mxu0 %v1189_v8  ;;  %v1195_v15 = vpack.c.bf16 %v283_v13, %v281_v12  ;;  %v282_v17 = vld [vmem:[#allocation3 + $0xd0] sm:$0xff]  ;;  %v285_v18 = vld [vmem:[#allocation3 + $0xe8] sm:$0xff]  ;;  %v287_v19 = vld [vmem:[#allocation3 + $0xf8] sm:$0xff]  ;;  %s1013_s15 = sshll.u32 %s245_s14, 4 }
  0x53   : > { %1192 = vmatprep.subr.bf16.mxu0 %v1191_v9  ;;  %v1197_v20 = vpack.c.bf16 %v282_v17, %v280_v16  ;;  %v284_v21 = vld [vmem:[#allocation3 + $0xe0] sm:$0xff]  ;;  %v1199_v22 = vpack.c.bf16 %v287_v19, %v285_v18  ;;  %v286_v23 = vld [vmem:[#allocation3 + $0xf0] sm:$0xff]  ;;  %v257_v26 = vld [vmem:[#allocation3 + $0x8] sm:$0xff]  ;;  %s1027_s7 = sshll.u32 %s1600_s22, 8  ;;  %s247_s23 = scalar_lea.vmem [#allocation8], %s1013_s15 }
  0x54   : > { %s252_s11 = scalar_lea.vmem %s1802_s0, %s1343_s8  ;;  %v259_v27 = vld [vmem:[#allocation3 + $0x18] sm:$0xff]  ;;  %v1201_v28 = vpack.c.bf16 %v286_v23, %v284_v21  ;;  %v256_v32 = vld [vmem:[#allocation3] sm:$0xff]  ;;  %v258_v33 = vld [vmem:[#allocation3 + $0x10] sm:$0xff]  ;;  %s921_s25 = sshll.u32 %s247_s23, 4  ;;  %s1759_s25 = int_to_ptr.vmem [resolvable:$true] %s921_s25 }
  0x55   : > { %v1707_v24 = vld [vmem:[%s252_s11] sm:$0xff]  ;;  %v1709_v25 = vld [vmem:[%s252_s11 + $0x8] sm:$0xff]  ;;  %v1203_v31 = vpack.c.bf16 %v259_v27, %v257_v26  ;;  %v1713_v34 = vld [vmem:[%s252_s11 + $0x10] sm:$0x3]  ;;  %v1205_v38 = vpack.c.bf16 %v258_v33, %v256_v32  ;;  %s1757_s30 = scalar_lea.hbm %s1807_s5, %s1027_s7  ;;  %s1761_s22 = scalar_lea.sflag [#allocation5], %s245_s14 }
  0x56   : > { %1194 = vmatpush1.bf16.msra.mxu0 %v1193_v14  ;;  %v356_v29 = vrot.slane %v1707_v24, 1  ;;  %v357_v30 = vrot.slane %v1709_v25, 1  ;;  %v261_v35 = vld [vmem:[#allocation3 + $0x28] sm:$0xff]  ;;  %v263_v36 = vld [vmem:[#allocation3 + $0x38] sm:$0xff]  ;;  %v260_v39 = vld [vmem:[#allocation3 + $0x20] sm:$0xff]  ;;  %v359_v41 = vrot.slane %v1713_v34, 1 }
  0x57   : > { %1196 = vmatprep.subr.bf16.mxu0 %v1195_v15  ;;  %v262_v40 = vld [vmem:[#allocation3 + $0x30] sm:$0xff]  ;;  %v1207_v42 = vpack.c.bf16 %v263_v36, %v261_v35  ;;  %v265_v43 = vld [vmem:[#allocation3 + $0x48] sm:$0xff]  ;;  %v304_v44 = vld [vmem:[#allocation6] sm:$0xff]  ;;  %v525_v33 = vrot.slane %v1707_v24, 2  ;;  %v526_v35 = vrot.slane %v1709_v25, 2  ;;  %s1467_s8 = scalar_lea.vmem %s1759_s25, 256 }
  0x58   : > { %v358_v37 = vsel %vm355_vm0, %v356_v29, %v357_v30  ;;  %v305_v45 = vld [vmem:[#allocation6 + $0x8] sm:$0xff]  ;;  %v267_v46 = vld [vmem:[#allocation3 + $0x58] sm:$0xff]  ;;  %v306_v48 = vld [vmem:[#allocation6 + $0x10] sm:$0xff]  ;;  %v1209_v51 = vpack.c.bf16 %v262_v40, %v260_v39  ;;  %v360_v52 = vsel %vm355_vm0, %v357_v30, %v359_v41  ;;  %v528_v41 = vrot.slane %v1713_v34, 2  ;;  %p1468_p10 = scmp.ne.s32.totalorder %s1759_s25, %s1467_s8  ;;  %p1820_p1 = scmp.ne.s32.totalorder %s1811_s28, 0 }
  0x59   : > { %v1267_v47 = vpack.c.bf16 %v305_v45, %v304_v44  ;;  %v307_v49 = vld [vmem:[#allocation6 + $0x18] sm:$0xff]  ;;  %v308_v53 = vld [vmem:[#allocation6 + $0x20] sm:$0xff]  ;;  %v309_v54 = vld [vmem:[#allocation6 + $0x28] sm:$0xff]  ;;  %v1211_v55 = vpack.c.bf16 %v267_v46, %v265_v43  ;;  %v527_v40 = vsel %vm524_vm2, %v525_v33, %v526_v35  ;;  %v617_v45 = vlaneseq  ;;  %s1546_s10 = smov [#allocation8]  }
  0x5a   : > { %1198 = vmatpush1.bf16.msra.mxu0 %v1197_v20  ;;  %v1271_v50 = vpack.c.bf16 %v307_v49, %v306_v48  ;;  %v264_v56 = vld [vmem:[#allocation3 + $0x40] sm:$0xff]  ;;  %v266_v57 = vld [vmem:[#allocation3 + $0x50] sm:$0xff]  ;;  %v269_v58 = vld [vmem:[#allocation3 + $0x68] sm:$0xff]  ;;  %v1275_v60 = vpack.c.bf16 %v309_v54, %v308_v53  ;;  %p1469_p2 = pnand %p1468_p10, %p1820_p1  ;;  %s1471_s9 = sshll.u32 %s1546_s10, 4  ;;  %s1472_s9 = int_to_ptr.vmem [resolvable:$false] %s1471_s9 }
  0x5b   : > { %1200 = vmatprep.subr.bf16.mxu0 %v1199_v22  ;;  %1268 = vmatprep.subr.bf16.mxu1 %v1267_v47  ;;  %v271_v59 = vld [vmem:[#allocation3 + $0x78] sm:$0xff]  ;;  %v1213_v61 = vpack.c.bf16 %v266_v57, %v264_v56  ;;  %v310_v62 = vld [vmem:[#allocation6 + $0x30] sm:$0xff]  ;;  %v268_v2 = vld [vmem:[#allocation3 + $0x60] sm:$0xff]  ;;  %v618_v34 = vshrl.u32 %v617_v45, 7  ;;  %s1473_s11 = scalar_lea.vmem %s1472_s9, 512  ;;  %p1474_p4 = scmp.lt.s32.totalorder %s1759_s25, %s1472_s9 }
  0x5c   : > { %1270 = vmatpush3.bf16.msra.mxu1 %v1267_v47  ;;  %v311_v63 = vld [vmem:[#allocation6 + $0x38] sm:$0xff]  ;;  %v1215_v1 = vpack.c.bf16 %v271_v59, %v269_v58  ;;  %v270_v3 = vld [vmem:[#allocation3 + $0x70] sm:$0xff]  ;;  %v289_v4 = vld [vmem:[#allocation3 + $0x108] sm:$0xff]  ;;  %p1470_p3 = pneg %p1469_p2  ;;  %p1475_p7 = scmp.lt.s32.totalorder %s1473_s11, %s1467_s8 }
  0x5d   : > { %1272 = vmatprep.subr.bf16.mxu1 %v1271_v50  ;;  %v291_v5 = vld [vmem:[#allocation3 + $0x118] sm:$0xff]  ;;  %v1279_v6 = vpack.c.bf16 %v311_v63, %v310_v62  ;;  %v1217_v7 = vpack.c.bf16 %v270_v3, %v268_v2  ;;  %v288_v9 = vld [vmem:[#allocation3 + $0x100] sm:$0xff]  ;;  %v290_v10 = vld [vmem:[#allocation3 + $0x110] sm:$0xff]  ;;  %v623_v47 = vsub.s32 1, %v618_v34 }
  0x5e   : > { %1202 = vmatpush1.bf16.msra.mxu0 %v1201_v28  ;;  %v1219_v8 = vpack.c.bf16 %v291_v5, %v289_v4  ;;  %v293_v11 = vld [vmem:[#allocation3 + $0x128] sm:$0xff]  ;;  %v295_v12 = vld [vmem:[#allocation3 + $0x138] sm:$0xff]  ;;  %v1221_v13 = vpack.c.bf16 %v290_v10, %v288_v9  ;;  %v292_v15 = vld [vmem:[#allocation3 + $0x120] sm:$0xff]  ;;  %p1476_p8 = por %p1475_p7, %p1474_p4 }
  0x5f   : > { %1204 = vmatprep.subr.bf16.mxu0 %v1203_v31  ;;  %v1223_v14 = vpack.c.bf16 %v295_v12, %v293_v11  ;;  %v294_v16 = vld [vmem:[#allocation3 + $0x130] sm:$0xff]  ;;  %v297_v17 = vld [vmem:[#allocation3 + $0x148] sm:$0xff]  ;;  %v299_v18 = vld [vmem:[#allocation3 + $0x158] sm:$0xff] }
  0x60   : > { %1274 = vmatpush3.bf16.msra.mxu1 %v1271_v50  ;;  %v1225_v19 = vpack.c.bf16 %v294_v16, %v292_v15  ;;  %v1227_v20 = vpack.c.bf16 %v299_v18, %v297_v17  ;;  %v296_v21 = vld [vmem:[#allocation3 + $0x140] sm:$0xff]  ;;  %v298_v22 = vld [vmem:[#allocation3 + $0x150] sm:$0xff]  ;;  %v301_v23 = vld [vmem:[#allocation3 + $0x168] sm:$0xff]  ;;  %v619_v15 = vsub.s32 0, %v618_v34  ;;  %p1477_p11 = pnand %p1476_p8, %p1470_p3 }
  0x61   : > { %1015 = vmatmul.mubr.msk.f32.vlgmr.msra.gmra.mrb[0].mxu0 %vm361_vm1, %v358_v37  ;;  %1276 = vmatprep.subr.bf16.mxu1 %v1275_v60  ;;  %v303_v26 = vld [vmem:[#allocation3 + $0x178] sm:$0xff]  ;;  %v1229_v27 = vpack.c.bf16 %v298_v22, %v296_v21  ;;  %v300_v29 = vld [vmem:[#allocation3 + $0x160] sm:$0xff]  ;;  %v302_v30 = vld [vmem:[#allocation3 + $0x170] sm:$0xff] }
  0x62   : > { %1206 = vmatpush1.bf16.msra.mxu0 %v1205_v38  ;;  %436 = vmatprep.mubr.f32.mxu0 %v1545_v0  ;;  %v1231_v28 = vpack.c.bf16 %v303_v26, %v301_v23  ;;  %v320_v31 = vld [vmem:[#allocation6 + $0x80] sm:$0xff]  ;;  %v321_v32 = vld [vmem:[#allocation6 + $0x88] sm:$0xff]  ;;  %v1233_v36 = vpack.c.bf16 %v302_v30, %v300_v29  ;;  %v322_v38 = vld [vmem:[#allocation6 + $0x90] sm:$0xff] }
  0x63   : > { %1208 = vmatprep.subr.bf16.mxu0 %v1207_v42  ;;  %v1235_v37 = vpack.c.bf16 %v321_v32, %v320_v31  ;;  %v323_v39 = vld [vmem:[#allocation6 + $0x98] sm:$0xff]  ;;  %v324_v43 = vld [vmem:[#allocation6 + $0xa0] sm:$0xff]  ;;  %v325_v44 = vld [vmem:[#allocation6 + $0xa8] sm:$0xff] }
  0x64   : > { %1278 = vmatpush3.bf16.msra.mxu1 %v1275_v60  ;;  %v1239_v42 = vpack.c.bf16 %v323_v39, %v322_v38  ;;  %v615_v46 = vld [vmem:[%s1804_s2] sm:$0x3]  ;;  %v312_v48 = vld [vmem:[#allocation6 + $0x40] sm:$0xff]  ;;  %v326_v50 = vld [vmem:[#allocation6 + $0xb0] sm:$0xff] }
  0x65   : > { %1016 = vmatmul.mubr.msk.f32.gmra.mrb[2].mxu0 %vm361_vm1, %v360_v52  ;;  %1280 = vmatprep.subr.bf16.mxu1 %v1279_v6  ;;  %v313_v49 = vld [vmem:[#allocation6 + $0x48] sm:$0xff]  ;;  %v624_v52 = vrot.slane %v615_v46, %v623_v47  ;;  %v314_v54 = vld [vmem:[#allocation6 + $0x50] sm:$0xff]  ;;  %v328_v57 = vld [vmem:[#allocation6 + $0xc0] sm:$0xff]  ;;  %v620_v16 = vrot.slane %v615_v46, %v619_v15 }
  0x66   : > { %1210 = vmatpush1.bf16.msra.mxu0 %v1209_v51  ;;  %511 = vmatprep.mubr.f32.mxu0 %v1545_v0  ;;  %v327_v51 = vld [vmem:[#allocation6 + $0xb8] sm:$0xff]  ;;  %v329_v58 = vld [vmem:[#allocation6 + $0xc8] sm:$0xff]  ;;  %v316_v60 = vld [vmem:[#allocation6 + $0x60] sm:$0xff] }
  0x67   : > { %1212 = vmatprep.subr.bf16.mxu0 %v1211_v55  ;;  %v1247_v53 = vpack.c.bf16 %v327_v51, %v326_v50  ;;  %v315_v55 = vld [vmem:[#allocation6 + $0x58] sm:$0xff]  ;;  %v1251_v59 = vpack.c.bf16 %v329_v58, %v328_v57  ;;  %v330_v63 = vld [vmem:[#allocation6 + $0xd0] sm:$0xff]  ;;  %v332_v5 = vld [vmem:[#allocation6 + $0xe0] sm:$0xff] }
  0x68   : > { %1282 = vmatpush3.bf16.msra.mxu1 %v1279_v6  ;;  %v1287_v56 = vpack.c.bf16 %v315_v55, %v314_v54  ;;  %v318_v3 = vld [vmem:[#allocation6 + $0x70] sm:$0xff]  ;;  %v319_v4 = vld [vmem:[#allocation6 + $0x78] sm:$0xff]  ;;  %v336_v9 = vld [vmem:[#allocation6 + $0x100] sm:$0xff] }
  0x69   : > { %v1295_v6 = vpack.c.bf16 %v319_v4, %v318_v3  ;;  %v337_v10 = vld [vmem:[#allocation6 + $0x108] sm:$0xff]  ;;  %v334_v11 = vld [vmem:[#allocation6 + $0xf0] sm:$0xff]  ;;  %v339_v33 = vld [vmem:[#allocation6 + $0x118] sm:$0xff] }
  0x6a   : > { %1214 = vmatpush1.bf16.msra.mxu0 %v1213_v61  ;;  %v317_v61 = vld [vmem:[#allocation6 + $0x68] sm:$0xff]  ;;  %v1299_v12 = vpack.c.bf16 %v337_v10, %v336_v9  ;;  %v338_v32 = vld [vmem:[#allocation6 + $0x110] sm:$0xff]  ;;  %v343_v47 = vld [vmem:[#allocation6 + $0x138] sm:$0xff] }
  0x6b   : > { %1216 = vmatprep.subr.bf16.mxu0 %v1215_v1  ;;  %v1291_v62 = vpack.c.bf16 %v317_v61, %v316_v60  ;;  %v331_v1 = vld [vmem:[#allocation6 + $0xd8] sm:$0xff]  ;;  %v342_v46 = vld [vmem:[#allocation6 + $0x130] sm:$0xff]  ;;  %v348_v54 = vld [vmem:[#allocation6 + $0x160] sm:$0xff] }
  0x6c   : > { %v1255_v2 = vpack.c.bf16 %v331_v1, %v330_v63  ;;  %v346_v51 = vld [vmem:[#allocation6 + $0x150] sm:$0xff]  ;;  %v349_v55 = vld [vmem:[#allocation6 + $0x168] sm:$0xff]  ;;  %v351_v58 = vld [vmem:[#allocation6 + $0x178] sm:$0xff] }
  0x6d   : > { %v350_v57 = vld [vmem:[#allocation6 + $0x170] sm:$0xff] }
  0x6e   : > { %1218 = vmatpush1.bf16.msra.mxu0 %v1217_v7  ;;  %v333_v7 = vld [vmem:[#allocation6 + $0xe8] sm:$0xff] }
  0x6f   : > { %1220 = vmatprep.subr.bf16.mxu0 %v1219_v8  ;;  %v1259_v8 = vpack.c.bf16 %v333_v7, %v332_v5 }
  0x71   : > { %1017 = vmatmul.mubr.msk.f32.vlgmr.msra.gmra.mrb[0].mxu0 %vm361_vm1, %v1707_v24  ;;  %v529_v24 = vsel %vm524_vm2, %v526_v35, %v528_v41  ;;  %v1303_v35 = vpack.c.bf16 %v339_v33, %v338_v32 }
  0x72   : > { %1222 = vmatpush1.bf16.msra.mxu0 %v1221_v13  ;;  %517 = vmatprep.mubr.f32.mxu0 %v1545_v0  ;;  %v335_v13 = vld [vmem:[#allocation6 + $0xf8] sm:$0xff] }
  0x73   : > { %1224 = vmatprep.subr.bf16.mxu0 %v1223_v14  ;;  %v1263_v14 = vpack.c.bf16 %v335_v13, %v334_v11 }
  0x75   : > { %1018 = vmatmul.mubr.msk.f32.gmra.mrb[2].mxu0 %vm361_vm1, %v1709_v25  ;;  %v1243_v25 = vpack.c.bf16 %v325_v44, %v324_v43 }
  0x76   : > { %1226 = vmatpush1.bf16.msra.mxu0 %v1225_v19  ;;  %598 = vmatprep.mubr.f32.mxu0 %v1545_v0 }
  0x77   : > { %1228 = vmatprep.subr.bf16.mxu0 %v1227_v20 }
  0x7a   : > { %1230 = vmatpush1.bf16.msra.mxu0 %v1229_v27 }
  0x7b   : > { %1232 = vmatprep.subr.bf16.mxu0 %v1231_v28 }
  0x7e   : > { %1234 = vmatpush1.bf16.msra.mxu0 %v1233_v36  ;;  %v340_v36 = vld [vmem:[#allocation6 + $0x120] sm:$0xff] }
  0x7f   : > { %1236 = vmatprep.subr.bf16.mxu0 %v1235_v37 }
  0x81   : > { %1019 = vmatmul.mubr.msk.f32.vlgmr.msra.gmra.mrb[0].mxu0 %vm361_vm1, %v527_v40  ;;  %v341_v40 = vld [vmem:[#allocation6 + $0x128] sm:$0xff] }
  0x82   : > { %604 = vmatprep.mubr.f32.mxu0 %v1545_v0  ;;  %1238 = vmatpush3.bf16.msra.mxu0 %v1235_v37  ;;  %v1283_v0 = vpack.c.bf16 %v313_v49, %v312_v48  ;;  %v1307_v34 = vpack.c.bf16 %v341_v40, %v340_v36  ;;  %v1311_v48 = vpack.c.bf16 %v343_v47, %v342_v46  ;;  %v344_v49 = vld [vmem:[#allocation6 + $0x140] sm:$0xff] }
  0x83   : > { %1240 = vmatprep.subr.bf16.mxu0 %v1239_v42 }
  0x84   : > { %1284 = vmatprep.subr.bf16.mxu1 %v1283_v0 }
  0x85   : > { %1020 = vmatmul.mubr.msk.f32.gmra.mrb[2].mxu0 %vm361_vm1, %v529_v24  ;;  %1286 = vmatpush3.bf16.msra.mxu1 %v1283_v0  ;;  %v345_v0 = vld [vmem:[#allocation6 + $0x148] sm:$0xff] }
  0x86   : > { %1242 = vmatpush3.bf16.msra.mxu0 %v1239_v42  ;;  %1288 = vmatprep.subr.bf16.mxu1 %v1287_v56  ;;  %v1315_v50 = vpack.c.bf16 %v345_v0, %v344_v49 }
  0x87   : > { %1244 = vmatprep.subr.bf16.mxu0 %v1243_v25 }
  0x89   : > { %1290 = vmatpush3.bf16.msra.mxu1 %v1287_v56  ;;  %v1323_v56 = vpack.c.bf16 %v349_v55, %v348_v54 }
  0x8a   : > { %1246 = vmatpush3.bf16.msra.mxu0 %v1243_v25  ;;  %1292 = vmatprep.subr.bf16.mxu1 %v1291_v62 }
  0x8b   : > { %1248 = vmatprep.subr.bf16.mxu0 %v1247_v53 }
  0x8d   : > { %1294 = vmatpush3.bf16.msra.mxu1 %v1291_v62 }
  0x8e   : > { %1250 = vmatpush3.bf16.msra.mxu0 %v1247_v53  ;;  %1296 = vmatprep.subr.bf16.mxu1 %v1295_v6 }
  0x8f   : > { %1252 = vmatprep.subr.bf16.mxu0 %v1251_v59 }
  0x91   : > { %1298 = vmatpush3.bf16.msra.mxu1 %v1295_v6 }
  0x92   : > { %1254 = vmatpush3.bf16.msra.mxu0 %v1251_v59  ;;  %1300 = vmatprep.subr.bf16.mxu1 %v1299_v12  ;;  %v1327_v59 = vpack.c.bf16 %v351_v58, %v350_v57 }
  0x93   : > { %1256 = vmatprep.subr.bf16.mxu0 %v1255_v2 }
  0x96   : > { %1258 = vmatpush3.bf16.msra.mxu0 %v1255_v2  ;;  %v1021_v2 = vld [vmem:[%s1806_s4] ss:$0 sm:$0xff] }
  0x97   : > { %1260 = vmatprep.subr.bf16.mxu0 %v1259_v8 }
  0x9a   : > { %1262 = vmatpush3.bf16.msra.mxu0 %v1259_v8 }
  0x9b   : > { %1264 = vmatprep.subr.bf16.mxu0 %v1263_v14 }
  0x9e   : > { %1266 = vmatpush3.bf16.msra.mxu0 %v1263_v14 }
 0x154   : > { %v600_v17 = vpop.f32.mrb[0].mxu0 }
 0x155   : > { %v627_v18 = vadd.f32 %v620_v16, %v600_v17  ;;  %v602_v19 = vpop.f32.mrb[1].mxu0 }
 0x156   : > { %v1739_v20 = vadd.f32 %v624_v52, %v602_v19 }
 0x157   : > { %vm631_vm3 = vcmp.gt.f32.partialorder %v627_v18, 0.0  ;;  %v633_v21 = vmul.f32 0.2, %v627_v18 }
 0x158   : > { %v606_v22 = vpop.f32.mrb[2].mxu0 }
 0x159   : > { %v635_v23 = vsel %vm631_vm3, %v627_v18, %v633_v21  ;;  %v629_v26 = vadd.f32 %v620_v16, %v606_v22  ;;  %v608_v27 = vpop.f32.mrb[3].mxu0 }
 0x15a   : > { %639 = vst [vmem:[#allocation2 + $0x1] sm:$0xff] %v635_v23  ;;  %v1741_v28 = vadd.f32 %v624_v52, %v608_v27  ;;  %v347_v52 = vld [vmem:[#allocation6 + $0x158] sm:$0xff] }
 0x15b   : > { %vm632_vm4 = vcmp.gt.f32.partialorder %v629_v26, 0.0  ;;  %v634_v29 = vmul.f32 0.2, %v629_v26  ;;  %v1319_v53 = vpack.c.bf16 %v347_v52, %v346_v51 }
 0x15d   : > { %v636_v30 = vsel %vm632_vm4, %v629_v26, %v634_v29 }
 0x15e   : > { %640 = vst [vmem:[#allocation2 + $0x9] sm:$0xff] %v636_v30 }
 0x161   : > { %v641_v31 = vld [vmem:[#allocation2] sm:$0xff] }
 0x162   : > { %1149 = vmatprep.mubr.f32.mxu1 %v641_v31  ;;  %v647_v37 = vrot.slane %v641_v31, 1  ;;  %v804_v41 = vrot.slane %v641_v31, 2 }
 0x165   : > { %v642_v38 = vld [vmem:[#allocation2 + $0x8] sm:$0xff]  ;;  %v643_v39 = vld [vmem:[#allocation2 + $0x10] sm:$0x3] }
 0x166   : > { %v648_v42 = vrot.slane %v642_v38, 1  ;;  %1150 = vmatmul.mubr.f32.vlgmr.msra.gmra.mrb[0].mxu1 %v642_v38  ;;  %v805_v43 = vrot.slane %v642_v38, 2  ;;  %v650_v44 = vrot.slane %v643_v39, 1  ;;  %v807_v60 = vrot.slane %v643_v39, 2 }
 0x167   : > { %1302 = vmatpush3.bf16.msra.mxu1 %v1299_v12 }
 0x168   : > { %v649_v24 = vsel %vm355_vm0, %v647_v37, %v648_v42  ;;  %1304 = vmatprep.subr.bf16.mxu1 %v1303_v35  ;;  %v806_v25 = vsel %vm524_vm2, %v804_v41, %v805_v43  ;;  %v651_v45 = vsel %vm355_vm0, %v648_v42, %v650_v44  ;;  %v808_v61 = vsel %vm524_vm2, %v805_v43, %v807_v60 }
 0x169   : > { %1114 = vmatprep.mubr.f32.mxu0 %v649_v24  ;;  %1184 = vmatprep.mubr.f32.mxu1 %v806_v25 }
 0x16a   : > { %1115 = vmatmul.mubr.f32.vlgmr.msra.gmra.mrb[4].mxu0 %v651_v45 }
 0x16b   : > { %1306 = vmatpush3.bf16.msra.mxu1 %v1303_v35 }
 0x16c   : > { %1308 = vmatprep.subr.bf16.mxu1 %v1307_v34 }
 0x16f   : > { %1310 = vmatpush3.bf16.msra.mxu1 %v1307_v34 }
 0x170   : > { %1312 = vmatprep.subr.bf16.mxu1 %v1311_v48 }
 0x173   : > { %1314 = vmatpush3.bf16.msra.mxu1 %v1311_v48 }
 0x174   : > { %1316 = vmatprep.subr.bf16.mxu1 %v1315_v50 }
 0x177   : > { %1318 = vmatpush3.bf16.msra.mxu1 %v1315_v50 }
 0x178   : > { %1320 = vmatprep.subr.bf16.mxu1 %v1319_v53 }
 0x17b   : > { %1322 = vmatpush3.bf16.msra.mxu1 %v1319_v53 }
 0x17c   : > { %1324 = vmatprep.subr.bf16.mxu1 %v1323_v56 }
 0x17f   : > { %1326 = vmatpush3.bf16.msra.mxu1 %v1323_v56 }
 0x180   : > { %1328 = vmatprep.subr.bf16.mxu1 %v1327_v59 }
 0x183   : > { %1330 = vmatpush3.bf16.msra.mxu1 %v1327_v59 }
 0x186   : > { %1185 = vmatmul.mubr.f32.vlgmr.msra.gmra.mrb[0].mxu1 %v808_v61 }
 0x23d   : > { %v1116_v62 = vpop.f32.mrb[4].mxu0 }
 0x23e   : > { %v720_v63 = vpop.f32.mrb[5].mxu0 }
 0x259   : > { %v1186_v1 = vpop.f32.mrb[0].mxu1 }
 0x25a   : > { %v1331_v3 = vadd.f32 %v1186_v1, %v1116_v62  ;;  %v877_v4 = vpop.f32.mrb[1].mxu1 }
 0x25b   : > { %v1332_v5 = vadd.f32 %v877_v4, %v720_v63 }
 0x25c   : > { %v896_v6 = vadd.f32 %v1331_v3, %v1021_v2 }
 0x25d   : > { %v895_v7 = vadd.f32 %v1332_v5, %v1021_v2 }
 0x25e   : > { %v898_v8 = vadd.f32 %v896_v6, %v1741_v28 }
 0x25f   : > { %v897_v9 = vadd.f32 %v895_v7, %v1739_v20 }
 0x260   : > { %vm900_vm5 = vcmp.gt.f32.partialorder %v898_v8, 0.0  ;;  %v902_v10 = vmul.f32 0.2, %v898_v8 }
 0x261   : > { %vm899_vm6 = vcmp.gt.f32.partialorder %v897_v9, 0.0  ;;  %v901_v11 = vmul.f32 0.2, %v897_v9 }
 0x262   : > { %v904_v12 = vsel %vm900_vm5, %v898_v8, %v902_v10 }
 0x263   : > { %906 = vst [vmem:[%s247_s23 + $0x8] sm:$0xff] %v904_v12  ;;  %v903_v13 = vsel %vm899_vm6, %v897_v9, %v901_v11 }
 0x264   : > { %905 = vst [vmem:[%s247_s23] sm:$0xff] %v903_v13 }
 0x265   : > { %1480 = shalt.err (!%p1477_p11)
}
 0x266   : > { %s1481_s12 = scalar_lea.hbm %s1757_s30, 256  ;;  %s1485_s15 = scalar_lea.hbm %s1807_s5, 512 }
 0x267   : > { %p1482_p13 = scmp.ne.s32.totalorder %s1757_s30, %s1481_s12  ;;  %p1486_p6 = scmp.lt.u32.totalorder %s1757_s30, %s1807_s5 }
 0x268   : > { %p1487_p9 = scmp.lt.u32.totalorder %s1485_s15, %s1481_s12  ;;  %p1489_p10 = scmp.lt.u32.totalorder %s1481_s12, %s1757_s30 }
 0x269   : > { %p1483_p0 = pnand %p1482_p13, %p1820_p1 }
 0x26a   : > { %p1488_p12 = por %p1487_p9, %p1486_p6 }
 0x26b   : > { %p1484_p5 = pneg %p1483_p0 }
 0x26c   : > { %p1490_p2 = por %p1489_p10, %p1488_p12 }
 0x26e   : > { %p1491_p3 = pnand %p1490_p2, %p1484_p5 }
 0x270   : > { %1494 = shalt.err (!%p1491_p3)
}
 0x271   : > { %s1547_s7 = smov 128   ;;  %s1548_s23 = smov 8  }
 0x272   : > { %1352 = dma.vmem_to_hbm [thread:$0]  (%p1820_p1), %s1759_s25, 256, %s1757_s30, %s1761_s22, %s1547_s7, %s1547_s7, %s1548_s23  }
 0x273 PF: > { %p1369_p4 = scmp.ge.s32.totalorder %s1537_s21, 2  ;;  %s936_s26 = sand.u32 1, %s1525_s18  }
 0x274   : > { %p1821_p7 = scmp.ne.s32.totalorder %s1812_s29, 0  ;;  %s937_s6 = scalar_lea.sflag [#allocation5], %s936_s26 }
 0x276   : > { %p1362_p8 = pnand %p1369_p4, %p1821_p7 }
 0x278   : > { %1520 = dma.done.wait (!%p1362_p8), %s937_s6, 256  }
 0x279   : > { %1522 = vsyncadd (!%p1362_p8), %s937_s6, 4294967040  ;;  %p17_p11 = scmp.ge.s32.totalorder %s1604_s24, 4   ;;  %s1822_s18 = smov %s1529_s19 }
 0x27a   : > { %s1823_s19 = smov %s1533_s20  ;;  %s1824_s20 = smov %s1615_s27 }
 0x27b   : > { %s1825_s21 = smov %s1604_s24  ;;  %19 = sbr.rel (!%p17_p11) target bundleno = 5 (0x5), region = 84 }
 0x282   :  { %942 = vsyncpa [#allocation4], 1 }
 0x283   :  { %944 = vsyncpa [#allocation4 + $0x1], 1 }
 0x284   :  { %945 = vsyncpa [#allocation7], 1 }
 0x285   :  { %946 = vsyncpa [#allocation5], 1 }
 0x286   :  { %948 = vsyncpa [#allocation5 + $0x1], 1 }

</bundles_post_ra>
